<compile_context>
chip_gen: v7x
topology: tpu7x:2x2x1
jax: 0.10.0
libtpu: 0.0.40
codegen_flags: <defaults>
</compile_context>

<pallas_src>
import functools
from math import sqrt

import jax
import jax.numpy as jnp
from jax.experimental import pallas as pl
from jax.experimental.pallas import tpu as pltpu


def _pick_tile(n, preferred):
    """Largest divisor of n that is <= preferred and TPU-friendly (mult of 8),
    falling back to the full axis (always a legal block)."""
    if n <= preferred:
        return n
    for t in range(preferred, 7, -1):
        if n % t == 0 and t % 8 == 0:
            return t
    return n


def _flash_attention_kernel(q_ref, k_ref, v_ref, o_ref,
                            m_scr, l_scr, acc_scr, *, scale, H, E, D):
    # q_ref: (1, tq, H*E)  resident across the S grid axis
    # k_ref: (1, tk, H*E)
    # v_ref: (1, tk, H*D)
    # o_ref: (1, tq, H*D)  resident across the S grid axis, written at last step
    # m_scr/l_scr: (H, tq, 1) f32 ; acc_scr: (H, tq, D) f32
    si = pl.program_id(2)
    n_s = pl.num_programs(2)

    @pl.when(si == 0)
    def _init():
        m_scr[...] = jnp.full(m_scr.shape, -jnp.inf, dtype=m_scr.dtype)
        l_scr[...] = jnp.zeros(l_scr.shape, dtype=l_scr.dtype)
        acc_scr[...] = jnp.zeros(acc_scr.shape, dtype=acc_scr.dtype)

    # Static unroll over heads: head slices are static lane offsets (no
    # HBM transpose, no dynamic lane slicing).
    for h in range(H):
        q = q_ref[0, :, h * E:(h + 1) * E] * scale       # (tq, E); scale folded into q
        k = k_ref[0, :, h * E:(h + 1) * E]               # (tk, E)
        v = v_ref[0, :, h * D:(h + 1) * D]               # (tk, D)

        # scores[l, s] = sum_e q[l, e] * k[s, e]   (== einsum 'le,se->ls')
        s = jax.lax.dot_general(
            q, k,
            dimension_numbers=(((1,), (1,)), ((), ())),
            preferred_element_type=jnp.float32,
        )                                                # (tq, tk) f32

        m_prev = m_scr[h]                                # (tq, 1)
        l_prev = l_scr[h]
        m_new = jnp.maximum(m_prev, jnp.max(s, axis=-1, keepdims=True))
        alpha = jnp.exp(m_prev - m_new)                  # EUP
        p = jnp.exp(s - m_new)                           # (tq, tk), EUP
        l_scr[h] = alpha * l_prev + jnp.sum(p, axis=-1, keepdims=True)
        acc_scr[h] = alpha * acc_scr[h] + jnp.dot(
            p.astype(v.dtype), v, preferred_element_type=jnp.float32)
        m_scr[h] = m_new

    @pl.when(si == n_s - 1)
    def _finalize():
        for h in range(H):
            inv = pl.reciprocal(l_scr[h], approx=True)   # EUP vrcp, ~free
            o_ref[0, :, h * D:(h + 1) * D] = (acc_scr[h] * inv).astype(o_ref.dtype)


def full_attention(queries, keys, values, scale=None, *,
                   tq_target=256, tk_target=256):
    """queries: (B, L, H, E), keys: (B, S, H, E), values: (B, S, H, D)."""
    B, L, H, E = queries.shape
    _, S, _, D = values.shape
    scale = scale if scale is not None else 1.0 / sqrt(E)

    # Free contiguous views -- no extra HBM read/write passes.
    q = queries.reshape(B, L, H * E)
    k = keys.reshape(B, S, H * E)
    v = values.reshape(B, S, H * D)

    tq = _pick_tile(L, tq_target)
    tk = _pick_tile(S, tk_target)
    grid = (B, L // tq, S // tk)

    kernel = functools.partial(_flash_attention_kernel,
                               scale=scale, H=H, E=E, D=D)

    itemsize = queries.dtype.itemsize
    cost = pl.CostEstimate(
        flops=2 * B * H * L * S * (E + D),
        transcendentals=B * H * L * S,
        bytes_accessed=(q.size + k.size + v.size + B * L * H * D) * itemsize,
    )

    out = pl.pallas_call(
        kernel,
        out_shape=jax.ShapeDtypeStruct((B, L, H * D), queries.dtype),
        grid_spec=pltpu.PrefetchScalarGridSpec(
            num_scalar_prefetch=0,
            grid=grid,
            in_specs=[
                pl.BlockSpec((1, tq, H * E), lambda b, qi, si: (b, qi, 0)),
                pl.BlockSpec((1, tk, H * E), lambda b, qi, si: (b, si, 0)),
                pl.BlockSpec((1, tk, H * D), lambda b, qi, si: (b, si, 0)),
            ],
            out_specs=pl.BlockSpec((1, tq, H * D), lambda b, qi, si: (b, qi, 0)),
            scratch_shapes=[
                pltpu.VMEM((H, tq, 1), jnp.float32),   # running max m
                pltpu.VMEM((H, tq, 1), jnp.float32),   # running denom l
                pltpu.VMEM((H, tq, D), jnp.float32),   # running numerator acc
            ],
        ),
        compiler_params=pltpu.CompilerParams(
            dimension_semantics=("parallel", "parallel", "arbitrary"),
            vmem_limit_bytes=48 * 1024 * 1024,  # headroom vs v7x's 64 MiB VMEM
        ),
        cost_estimate=cost,
    )(q, k, v)

    # back to PyTorch axis order (B, L, H, D) -- free reshape, no transpose
    return out.reshape(B, L, H, D)


def _reference(queries, keys, values, scale=None):
    B, L, H, E = queries.shape
    scale = scale if scale is not None else 1.0 / sqrt(E)
    scores = jnp.einsum('blhe,bshe->bhls', queries, keys)
    a = jax.nn.softmax(scale * scores, axis=-1)
    return jnp.einsum('bhls,bshd->blhd', a, values)


if __name__ == "__main__":
    key = jax.random.PRNGKey(0)
    kq, kk, kv = jax.random.split(key, 3)

    B, L, S, H, E, D = 2, 8, 8, 2, 32, 32
    queries = jax.random.normal(kq, (B, L, H, E), dtype=jnp.float32)
    keys    = jax.random.normal(kk, (B, S, H, E), dtype=jnp.float32)
    values  = jax.random.normal(kv, (B, S, H, D), dtype=jnp.float32)

    out = full_attention(queries, keys, values)
    out = jax.block_until_ready(out)

    ref = _reference(queries, keys, values)
    assert out.shape == (B, L, H, D)
    # slightly looser tolerance due to EUP approx reciprocal in the softmax denom
    assert jnp.allclose(out, ref, atol=5e-3, rtol=5e-3)

    print("KERNEL_OK")
</pallas_src>

<mosaic_0001>
module attributes {stable_mosaic.version = 11 : i64} {
  func.func @_flash_attention_kernel(%arg0: i32, %arg1: i32, %arg2: i32, %arg3: memref<1x8x64xf32, #tpu.memory_space<vmem>>, %arg4: memref<1x8x64xf32, #tpu.memory_space<vmem>>, %arg5: memref<1x8x64xf32, #tpu.memory_space<vmem>>, %arg6: memref<1x8x64xf32, #tpu.memory_space<vmem>>, %arg7: memref<2x8x1xf32, #tpu.memory_space<vmem>>, %arg8: memref<2x8x1xf32, #tpu.memory_space<vmem>>, %arg9: memref<2x8x32xf32, #tpu.memory_space<vmem>>) attributes {dimension_semantics = [#tpu.dimension_semantics<parallel>, #tpu.dimension_semantics<parallel>, #tpu.dimension_semantics<arbitrary>], iteration_bounds = array<i64: 2, 1, 1>, scalar_prefetch = 0 : i64, scratch_operands = 3 : i64, tpu.core_type = #tpu.core_type<tc>, window_params = [{transform_indices = @transform_0, window_bounds = array<i64: 1, 8, 64>}, {transform_indices = @transform_1, window_bounds = array<i64: 1, 8, 64>}, {transform_indices = @transform_2, window_bounds = array<i64: 1, 8, 64>}, {transform_indices = @transform_3, window_bounds = array<i64: 1, 8, 64>}]} {
    %c0_i32 = arith.constant 0 : i32
    %0 = arith.cmpi eq, %arg2, %c0_i32 : i32
    %1 = arith.extui %0 : i1 to i32
    %c0_i32_0 = arith.constant 0 : i32
    %2 = arith.cmpi ne, %1, %c0_i32_0 : i32
    scf.if %2 {
      %cst_63 = arith.constant 0xFF800000 : f32
      %86 = vector.broadcast %cst_63 : f32 to vector<2x8x1xf32>
      %c0_64 = arith.constant 0 : index
      %c0_65 = arith.constant 0 : index
      %c0_66 = arith.constant 0 : index
      %87 = vector.load %arg7[%c0_64, %c0_65, %c0_66] : memref<2x8x1xf32, #tpu.memory_space<vmem>>, vector<2x8x1xf32>
      tpu.vector_store %arg7[%c0_64, %c0_65, %c0_66], %86 {strides = array<i32>} : memref<2x8x1xf32, #tpu.memory_space<vmem>>, vector<2x8x1xf32>,
      %cst_67 = arith.constant 0.000000e+00 : f32
      %88 = vector.broadcast %cst_67 : f32 to vector<2x8x1xf32>
      %c0_68 = arith.constant 0 : index
      %c0_69 = arith.constant 0 : index
      %c0_70 = arith.constant 0 : index
      %89 = vector.load %arg8[%c0_68, %c0_69, %c0_70] : memref<2x8x1xf32, #tpu.memory_space<vmem>>, vector<2x8x1xf32>
      tpu.vector_store %arg8[%c0_68, %c0_69, %c0_70], %88 {strides = array<i32>} : memref<2x8x1xf32, #tpu.memory_space<vmem>>, vector<2x8x1xf32>,
      %cst_71 = arith.constant 0.000000e+00 : f32
      %90 = vector.broadcast %cst_71 : f32 to vector<2x8x32xf32>
      %c0_72 = arith.constant 0 : index
      %c0_73 = arith.constant 0 : index
      %c0_74 = arith.constant 0 : index
      %91 = vector.load %arg9[%c0_72, %c0_73, %c0_74] : memref<2x8x32xf32, #tpu.memory_space<vmem>>, vector<2x8x32xf32>
      tpu.vector_store %arg9[%c0_72, %c0_73, %c0_74], %90 {strides = array<i32>} : memref<2x8x32xf32, #tpu.memory_space<vmem>>, vector<2x8x32xf32>,
    } else {
    }
    %c0 = arith.constant 0 : index
    %c0_1 = arith.constant 0 : index
    %c0_2 = arith.constant 0 : index
    %3 = vector.load %arg3[%c0, %c0_1, %c0_2] : memref<1x8x64xf32, #tpu.memory_space<vmem>>, vector<1x8x32xf32>
    %4 = vector.shape_cast %3 : vector<1x8x32xf32> to vector<8x32xf32>
    %cst = arith.constant 0.176776692 : f32
    %5 = vector.broadcast %cst : f32 to vector<8x32xf32>
    %6 = arith.mulf %4, %5 : vector<8x32xf32>
    %c0_3 = arith.constant 0 : index
    %c0_4 = arith.constant 0 : index
    %c0_5 = arith.constant 0 : index
    %7 = vector.load %arg4[%c0_3, %c0_4, %c0_5] : memref<1x8x64xf32, #tpu.memory_space<vmem>>, vector<1x8x32xf32>
    %8 = vector.shape_cast %7 : vector<1x8x32xf32> to vector<8x32xf32>
    %c0_6 = arith.constant 0 : index
    %c0_7 = arith.constant 0 : index
    %c0_8 = arith.constant 0 : index
    %9 = vector.load %arg5[%c0_6, %c0_7, %c0_8] : memref<1x8x64xf32, #tpu.memory_space<vmem>>, vector<1x8x32xf32>
    %10 = vector.shape_cast %9 : vector<1x8x32xf32> to vector<8x32xf32>
    %cst_9 = arith.constant dense<0.000000e+00> : vector<8x8xf32>
    %11 = tpu.matmul %6, %8, %cst_9 {dimension_numbers = #tpu.dot_dimension_numbers<[1], [1], [0], [0], [0, 0, 1, 0], [], []>} : vector<8x32xf32>, vector<8x32xf32>, vector<8x8xf32> -> vector<8x8xf32>
    %c0_10 = arith.constant 0 : index
    %c0_11 = arith.constant 0 : index
    %c0_12 = arith.constant 0 : index
    %12 = vector.load %arg7[%c0_10, %c0_11, %c0_12] : memref<2x8x1xf32, #tpu.memory_space<vmem>>, vector<1x8x1xf32>
    %13 = vector.shape_cast %12 : vector<1x8x1xf32> to vector<8x1xf32>
    %c0_13 = arith.constant 0 : index
    %c0_14 = arith.constant 0 : index
    %c0_15 = arith.constant 0 : index
    %14 = vector.load %arg8[%c0_13, %c0_14, %c0_15] : memref<2x8x1xf32, #tpu.memory_space<vmem>>, vector<1x8x1xf32>
    %15 = vector.shape_cast %14 : vector<1x8x1xf32> to vector<8x1xf32>
    %cst_16 = arith.constant dense<0xFF800000> : vector<8xf32>
    %16 = vector.multi_reduction <maximumf>, %11, %cst_16 [1] : vector<8x8xf32> to vector<8xf32>
    %17 = vector.shape_cast %16 : vector<8xf32> to vector<8x1xf32>
    %18 = arith.maximumf %13, %17 : vector<8x1xf32>
    %19 = arith.subf %13, %18 : vector<8x1xf32>
    %20 = math.exp %19 : vector<8x1xf32>
    %21 = vector.broadcast %18 : vector<8x1xf32> to vector<8x8xf32>
    %22 = arith.subf %11, %21 : vector<8x8xf32>
    %23 = math.exp %22 : vector<8x8xf32>
    %24 = arith.mulf %20, %15 : vector<8x1xf32>
    %cst_17 = arith.constant dense<0.000000e+00> : vector<8xf32>
    %25 = vector.multi_reduction <add>, %23, %cst_17 [1] : vector<8x8xf32> to vector<8xf32>
    %26 = vector.shape_cast %25 : vector<8xf32> to vector<8x1xf32>
    %27 = arith.addf %24, %26 : vector<8x1xf32>
    %c0_18 = arith.constant 0 : index
    %c0_19 = arith.constant 0 : index
    %c0_20 = arith.constant 0 : index
    %28 = vector.load %arg8[%c0_18, %c0_19, %c0_20] : memref<2x8x1xf32, #tpu.memory_space<vmem>>, vector<1x8x1xf32>
    %29 = vector.shape_cast %28 : vector<1x8x1xf32> to vector<8x1xf32>
    %30 = vector.shape_cast %27 : vector<8x1xf32> to vector<1x8x1xf32>
    tpu.vector_store %arg8[%c0_18, %c0_19, %c0_20], %30 {strides = array<i32>} : memref<2x8x1xf32, #tpu.memory_space<vmem>>, vector<1x8x1xf32>,
    %c0_21 = arith.constant 0 : index
    %c0_22 = arith.constant 0 : index
    %c0_23 = arith.constant 0 : index
    %31 = vector.load %arg9[%c0_21, %c0_22, %c0_23] : memref<2x8x32xf32, #tpu.memory_space<vmem>>, vector<1x8x32xf32>
    %32 = vector.shape_cast %31 : vector<1x8x32xf32> to vector<8x32xf32>
    %33 = vector.broadcast %20 : vector<8x1xf32> to vector<8x32xf32>
    %34 = arith.mulf %33, %32 : vector<8x32xf32>
    %cst_24 = arith.constant dense<0.000000e+00> : vector<8x32xf32>
    %35 = tpu.matmul %23, %10, %cst_24 {dimension_numbers = #tpu.dot_dimension_numbers<[1], [0], [0], [1], [0, 0, 1, 1], [], []>} : vector<8x8xf32>, vector<8x32xf32>, vector<8x32xf32> -> vector<8x32xf32>
    %36 = arith.addf %34, %35 : vector<8x32xf32>
    %c0_25 = arith.constant 0 : index
    %c0_26 = arith.constant 0 : index
    %c0_27 = arith.constant 0 : index
    %37 = vector.load %arg9[%c0_25, %c0_26, %c0_27] : memref<2x8x32xf32, #tpu.memory_space<vmem>>, vector<1x8x32xf32>
    %38 = vector.shape_cast %37 : vector<1x8x32xf32> to vector<8x32xf32>
    %39 = vector.shape_cast %36 : vector<8x32xf32> to vector<1x8x32xf32>
    tpu.vector_store %arg9[%c0_25, %c0_26, %c0_27], %39 {strides = array<i32>} : memref<2x8x32xf32, #tpu.memory_space<vmem>>, vector<1x8x32xf32>,
    %c0_28 = arith.constant 0 : index
    %c0_29 = arith.constant 0 : index
    %c0_30 = arith.constant 0 : index
    %40 = vector.load %arg7[%c0_28, %c0_29, %c0_30] : memref<2x8x1xf32, #tpu.memory_space<vmem>>, vector<1x8x1xf32>
    %41 = vector.shape_cast %40 : vector<1x8x1xf32> to vector<8x1xf32>
    %42 = vector.shape_cast %18 : vector<8x1xf32> to vector<1x8x1xf32>
    tpu.vector_store %arg7[%c0_28, %c0_29, %c0_30], %42 {strides = array<i32>} : memref<2x8x1xf32, #tpu.memory_space<vmem>>, vector<1x8x1xf32>,
    %c0_31 = arith.constant 0 : index
    %c0_32 = arith.constant 0 : index
    %c32 = arith.constant 32 : index
    %43 = vector.load %arg3[%c0_31, %c0_32, %c32] : memref<1x8x64xf32, #tpu.memory_space<vmem>>, vector<1x8x32xf32>
    %44 = vector.shape_cast %43 : vector<1x8x32xf32> to vector<8x32xf32>
    %cst_33 = arith.constant 0.176776692 : f32
    %45 = vector.broadcast %cst_33 : f32 to vector<8x32xf32>
    %46 = arith.mulf %44, %45 : vector<8x32xf32>
    %c0_34 = arith.constant 0 : index
    %c0_35 = arith.constant 0 : index
    %c32_36 = arith.constant 32 : index
    %47 = vector.load %arg4[%c0_34, %c0_35, %c32_36] : memref<1x8x64xf32, #tpu.memory_space<vmem>>, vector<1x8x32xf32>
    %48 = vector.shape_cast %47 : vector<1x8x32xf32> to vector<8x32xf32>
    %c0_37 = arith.constant 0 : index
    %c0_38 = arith.constant 0 : index
    %c32_39 = arith.constant 32 : index
    %49 = vector.load %arg5[%c0_37, %c0_38, %c32_39] : memref<1x8x64xf32, #tpu.memory_space<vmem>>, vector<1x8x32xf32>
    %50 = vector.shape_cast %49 : vector<1x8x32xf32> to vector<8x32xf32>
    %cst_40 = arith.constant dense<0.000000e+00> : vector<8x8xf32>
    %51 = tpu.matmul %46, %48, %cst_40 {dimension_numbers = #tpu.dot_dimension_numbers<[1], [1], [0], [0], [0, 0, 1, 0], [], []>} : vector<8x32xf32>, vector<8x32xf32>, vector<8x8xf32> -> vector<8x8xf32>
    %c1 = arith.constant 1 : index
    %c0_41 = arith.constant 0 : index
    %c0_42 = arith.constant 0 : index
    %52 = vector.load %arg7[%c1, %c0_41, %c0_42] : memref<2x8x1xf32, #tpu.memory_space<vmem>>, vector<1x8x1xf32>
    %53 = vector.shape_cast %52 : vector<1x8x1xf32> to vector<8x1xf32>
    %c1_43 = arith.constant 1 : index
    %c0_44 = arith.constant 0 : index
    %c0_45 = arith.constant 0 : index
    %54 = vector.load %arg8[%c1_43, %c0_44, %c0_45] : memref<2x8x1xf32, #tpu.memory_space<vmem>>, vector<1x8x1xf32>
    %55 = vector.shape_cast %54 : vector<1x8x1xf32> to vector<8x1xf32>
    %cst_46 = arith.constant dense<0xFF800000> : vector<8xf32>
    %56 = vector.multi_reduction <maximumf>, %51, %cst_46 [1] : vector<8x8xf32> to vector<8xf32>
    %57 = vector.shape_cast %56 : vector<8xf32> to vector<8x1xf32>
    %58 = arith.maximumf %53, %57 : vector<8x1xf32>
    %59 = arith.subf %53, %58 : vector<8x1xf32>
    %60 = math.exp %59 : vector<8x1xf32>
    %61 = vector.broadcast %58 : vector<8x1xf32> to vector<8x8xf32>
    %62 = arith.subf %51, %61 : vector<8x8xf32>
    %63 = math.exp %62 : vector<8x8xf32>
    %64 = arith.mulf %60, %55 : vector<8x1xf32>
    %cst_47 = arith.constant dense<0.000000e+00> : vector<8xf32>
    %65 = vector.multi_reduction <add>, %63, %cst_47 [1] : vector<8x8xf32> to vector<8xf32>
    %66 = vector.shape_cast %65 : vector<8xf32> to vector<8x1xf32>
    %67 = arith.addf %64, %66 : vector<8x1xf32>
    %c1_48 = arith.constant 1 : index
    %c0_49 = arith.constant 0 : index
    %c0_50 = arith.constant 0 : index
    %68 = vector.load %arg8[%c1_48, %c0_49, %c0_50] : memref<2x8x1xf32, #tpu.memory_space<vmem>>, vector<1x8x1xf32>
    %69 = vector.shape_cast %68 : vector<1x8x1xf32> to vector<8x1xf32>
    %70 = vector.shape_cast %67 : vector<8x1xf32> to vector<1x8x1xf32>
    tpu.vector_store %arg8[%c1_48, %c0_49, %c0_50], %70 {strides = array<i32>} : memref<2x8x1xf32, #tpu.memory_space<vmem>>, vector<1x8x1xf32>,
    %c1_51 = arith.constant 1 : index
    %c0_52 = arith.constant 0 : index
    %c0_53 = arith.constant 0 : index
    %71 = vector.load %arg9[%c1_51, %c0_52, %c0_53] : memref<2x8x32xf32, #tpu.memory_space<vmem>>, vector<1x8x32xf32>
    %72 = vector.shape_cast %71 : vector<1x8x32xf32> to vector<8x32xf32>
    %73 = vector.broadcast %60 : vector<8x1xf32> to vector<8x32xf32>
    %74 = arith.mulf %73, %72 : vector<8x32xf32>
    %cst_54 = arith.constant dense<0.000000e+00> : vector<8x32xf32>
    %75 = tpu.matmul %63, %50, %cst_54 {dimension_numbers = #tpu.dot_dimension_numbers<[1], [0], [0], [1], [0, 0, 1, 1], [], []>} : vector<8x8xf32>, vector<8x32xf32>, vector<8x32xf32> -> vector<8x32xf32>
    %76 = arith.addf %74, %75 : vector<8x32xf32>
    %c1_55 = arith.constant 1 : index
    %c0_56 = arith.constant 0 : index
    %c0_57 = arith.constant 0 : index
    %77 = vector.load %arg9[%c1_55, %c0_56, %c0_57] : memref<2x8x32xf32, #tpu.memory_space<vmem>>, vector<1x8x32xf32>
    %78 = vector.shape_cast %77 : vector<1x8x32xf32> to vector<8x32xf32>
    %79 = vector.shape_cast %76 : vector<8x32xf32> to vector<1x8x32xf32>
    tpu.vector_store %arg9[%c1_55, %c0_56, %c0_57], %79 {strides = array<i32>} : memref<2x8x32xf32, #tpu.memory_space<vmem>>, vector<1x8x32xf32>,
    %c1_58 = arith.constant 1 : index
    %c0_59 = arith.constant 0 : index
    %c0_60 = arith.constant 0 : index
    %80 = vector.load %arg7[%c1_58, %c0_59, %c0_60] : memref<2x8x1xf32, #tpu.memory_space<vmem>>, vector<1x8x1xf32>
    %81 = vector.shape_cast %80 : vector<1x8x1xf32> to vector<8x1xf32>
    %82 = vector.shape_cast %58 : vector<8x1xf32> to vector<1x8x1xf32>
    tpu.vector_store %arg7[%c1_58, %c0_59, %c0_60], %82 {strides = array<i32>} : memref<2x8x1xf32, #tpu.memory_space<vmem>>, vector<1x8x1xf32>,
    %c0_i32_61 = arith.constant 0 : i32
    %83 = arith.cmpi eq, %arg2, %c0_i32_61 : i32
    %84 = arith.extui %83 : i1 to i32
    %c0_i32_62 = arith.constant 0 : i32
    %85 = arith.cmpi ne, %84, %c0_i32_62 : i32
    scf.if %85 {
      %c0_63 = arith.constant 0 : index
      %c0_64 = arith.constant 0 : index
      %c0_65 = arith.constant 0 : index
      %86 = vector.load %arg8[%c0_63, %c0_64, %c0_65] : memref<2x8x1xf32, #tpu.memory_space<vmem>>, vector<1x8x1xf32>
      %87 = vector.shape_cast %86 : vector<1x8x1xf32> to vector<8x1xf32>
      %88 = tpu.reciprocal %87 {approx = true} : vector<8x1xf32> -> vector<8x1xf32>
      %c0_66 = arith.constant 0 : index
      %c0_67 = arith.constant 0 : index
      %c0_68 = arith.constant 0 : index
      %89 = vector.load %arg9[%c0_66, %c0_67, %c0_68] : memref<2x8x32xf32, #tpu.memory_space<vmem>>, vector<1x8x32xf32>
      %90 = vector.shape_cast %89 : vector<1x8x32xf32> to vector<8x32xf32>
      %91 = vector.broadcast %88 : vector<8x1xf32> to vector<8x32xf32>
      %92 = arith.mulf %90, %91 : vector<8x32xf32>
      %c0_69 = arith.constant 0 : index
      %c0_70 = arith.constant 0 : index
      %c0_71 = arith.constant 0 : index
      %93 = vector.load %arg6[%c0_69, %c0_70, %c0_71] : memref<1x8x64xf32, #tpu.memory_space<vmem>>, vector<1x8x32xf32>
      %94 = vector.shape_cast %93 : vector<1x8x32xf32> to vector<8x32xf32>
      %95 = vector.shape_cast %92 : vector<8x32xf32> to vector<1x8x32xf32>
      tpu.vector_store %arg6[%c0_69, %c0_70, %c0_71], %95 {strides = array<i32>} : memref<1x8x64xf32, #tpu.memory_space<vmem>>, vector<1x8x32xf32>,
      %c1_72 = arith.constant 1 : index
      %c0_73 = arith.constant 0 : index
      %c0_74 = arith.constant 0 : index
      %96 = vector.load %arg8[%c1_72, %c0_73, %c0_74] : memref<2x8x1xf32, #tpu.memory_space<vmem>>, vector<1x8x1xf32>
      %97 = vector.shape_cast %96 : vector<1x8x1xf32> to vector<8x1xf32>
      %98 = tpu.reciprocal %97 {approx = true} : vector<8x1xf32> -> vector<8x1xf32>
      %c1_75 = arith.constant 1 : index
      %c0_76 = arith.constant 0 : index
      %c0_77 = arith.constant 0 : index
      %99 = vector.load %arg9[%c1_75, %c0_76, %c0_77] : memref<2x8x32xf32, #tpu.memory_space<vmem>>, vector<1x8x32xf32>
      %100 = vector.shape_cast %99 : vector<1x8x32xf32> to vector<8x32xf32>
      %101 = vector.broadcast %98 : vector<8x1xf32> to vector<8x32xf32>
      %102 = arith.mulf %100, %101 : vector<8x32xf32>
      %c0_78 = arith.constant 0 : index
      %c0_79 = arith.constant 0 : index
      %c32_80 = arith.constant 32 : index
      %103 = vector.load %arg6[%c0_78, %c0_79, %c32_80] : memref<1x8x64xf32, #tpu.memory_space<vmem>>, vector<1x8x32xf32>
      %104 = vector.shape_cast %103 : vector<1x8x32xf32> to vector<8x32xf32>
      %105 = vector.shape_cast %102 : vector<8x32xf32> to vector<1x8x32xf32>
      tpu.vector_store %arg6[%c0_78, %c0_79, %c32_80], %105 {strides = array<i32>} : memref<1x8x64xf32, #tpu.memory_space<vmem>>, vector<1x8x32xf32>,
    } else {
    }
    return
  }
  func.func @transform_0(%arg0: i32, %arg1: i32, %arg2: i32) -> (i32, i32, i32) {
    %c0_i32 = arith.constant 0 : i32
    %c0_i32_0 = arith.constant 0 : i32
    return %arg0, %arg1, %c0_i32 : i32, i32, i32
  }
  func.func @transform_1(%arg0: i32, %arg1: i32, %arg2: i32) -> (i32, i32, i32) {
    %c0_i32 = arith.constant 0 : i32
    %c0_i32_0 = arith.constant 0 : i32
    return %arg0, %arg2, %c0_i32 : i32, i32, i32
  }
  func.func @transform_2(%arg0: i32, %arg1: i32, %arg2: i32) -> (i32, i32, i32) {
    %c0_i32 = arith.constant 0 : i32
    %c0_i32_0 = arith.constant 0 : i32
    return %arg0, %arg2, %c0_i32 : i32, i32, i32
  }
  func.func @transform_3(%arg0: i32, %arg1: i32, %arg2: i32) -> (i32, i32, i32) {
    %c0_i32 = arith.constant 0 : i32
    %c0_i32_0 = arith.constant 0 : i32
    return %arg0, %arg1, %c0_i32 : i32, i32, i32
  }
}

</mosaic_0001>

<bundles_post_ra>
// kernel: tpu_custom_call.1
= control target key start
LH: loop header
LB: loop body
LE: loop exit
PB: predicated region body
PF: predicated region fallthrough
CT: control target
= control target key end

     0   :  { %s1500_s0 = inlined_call_operand.hbm [shape: f32[2,8,64], index: 0, kind: input, shape index: {}]   ;;  %s1501_s1 = inlined_call_operand.hbm [shape: f32[2,8,64], index: 1, kind: input, shape index: {}]   ;;  %s1502_s2 = inlined_call_operand.hbm [shape: f32[2,8,64], index: 2, kind: input, shape index: {}]   ;;  %s1503_s3 = inlined_call_operand.hbm [shape: f32[2,8,64], index: 3, kind: output, shape index: {}]  }
   0x1   :  { %1509 = sst [smem:[#allocation18_spill]] %s1501_s1 }
   0x2   :  { %8 = vsyncpa [#allocation6], 0 }
   0x3   :  { %10 = vsyncpa [#allocation6 + $0x1], 0 }
   0x4   :  { %11 = vsyncpa [#allocation9], 0 }
   0x5   :  { %13 = vsyncpa [#allocation9 + $0x1], 0 }
   0x6   :  { %14 = vsyncpa [#allocation7], 0 }
   0x7   :  { %16 = vsyncpa [#allocation7 + $0x1], 0  ;;  %s1209_s12 = smov 0   ;;  %s1211_s13 = smov 0  }
   0x8   :  { %s1213_s14 = smov 0   ;;  %s1215_s15 = smov 0  }
   0x9   :  { %s1217_s16 = smov 0   ;;  %s1219_s17 = smov 0  }
   0xa LB: > { %1510 = sst [smem:[#allocation15_spill]] %s1173_s16  ;;  %s1240_s18 = sadd.s32 4294967295, %s1177_s17   ;;  %s1177_s17 = sphi %s1219_s17, %s22_s17   ;;  %s1173_s16 = sphi %s1217_s16, %s1531_s16   ;;  %s1169_s15 = sphi %s1215_s15, %s1530_s15   ;;  %s1165_s14 = sphi %s1213_s14, %s1534_s14   ;;  %s1161_s13 = sphi %s1211_s13, %s1533_s13   ;;  %s1157_s12 = sphi %s1209_s12, %s1532_s12  }
   0xb   : > { %s857_s19 = sadd.s32 4294967294, %s1177_s17   ;;  %s41_s20 = sadd.s32 1, %s1173_s16 }
   0xc   : > { %s50_s21 = sadd.s32 1, %s1165_s14  ;;  %p43_p0 = scmp.ge.s32.totalorder %s41_s20, 2 }
   0xd   : > { %p57_p1 = scmp.ne.s32.totalorder %s1165_s14, %s1161_s13  ;;  %p58_p2 = scmp.eq.s32.totalorder %s1177_s17, 0 }
   0xe   : > { %p63_p3 = scmp.ne.s32.totalorder %s1161_s13, %s1157_s12  ;;  %s1536_s20 = smov (%p43_p0, %s41_s20), 0 }
   0xf   : > { %1511 = sst [smem:[#allocation16_spill]] %s1536_s20  ;;  %p1252_p4 = por %p58_p2, %p57_p1 }
  0x10   : > { %p64_p5 = scmp.eq.s32.totalorder %s1240_s18, 0  ;;  %s45_s23 = ssub.s32 %s1173_s16, %s1536_s20 }
  0x11   : > { %p145_p6 = scmp.eq.s32.totalorder %s1240_s18, 1  ;;  %p48_p7 = scmp.eq.s32.totalorder %s45_s23, 0 }
  0x12   : > { %p1260_p8 = por %p64_p5, %p63_p3  ;;  %p151_p10 = scmp.eq.s32.totalorder %s857_s19, 1 }
  0x13   : > { %p1264_p9 = por %p145_p6, %p57_p1  ;;  %p931_p13 = scmp.lt.s32.totalorder %s1177_s17, 2 }
  0x14   : > { %s1513_s24 = scalar_select %p1260_p8, 1, 0 }
  0x15   : > { %s1514_s25 = scalar_select %p1264_p9, 1, 0 }
  0x16   : > { %s1269_s26 = scalar_select %p48_p7, %s1165_s14, %s50_s21  }
  0x17   : > { %p1271_p11 = por %p151_p10, %p63_p3  ;;  %s171_s28 = sand.u32 1, %s1165_s14  }
  0x18   : > { %1515 = sst [smem:[#allocation17_spill]] %s1269_s26  ;;  %s1280_s29 = sshll.u32 %s171_s28, 3 }
  0x19   : > { %s1516_s27 = scalar_select %p1271_p11, 1, 0 }
  0x1a   : > { %s1283_s30 = sshll.u32 %s1173_s16, 7  ;;  %p1287_p0 = pnand %p931_p13, %p1252_p4 }
  0x1b   : > { %s190_s5 = sand.u32 1, %s1177_s17   ;;  %s1518_s1 = sld [smem:[#allocation18_spill]] }
  0x1c   : > { %s1517_s4 = scalar_select %p1287_p0, 1, 0 }
  0x1d   : > { %s194_s9 = scalar_lea.vmem [#allocation8], %s1280_s29  ;;  %s1303_s11 = scalar_lea.sflag [#allocation9], %s190_s5 }
  0x1e   : > { %s202_s10 = sshll.u32 %s194_s9, 4  ;;  %p1309_p4 = pneg %p1287_p0  ;;  %s1300_s10 = int_to_ptr.vmem [resolvable:$true] %s202_s10 }
  0x21   : > { %s1296_s8 = scalar_lea.hbm %s1518_s1, %s1283_s30  ;;  %s1006_s6 = scalar_lea.hbm %s1518_s1, 256 }
  0x22   : > { %s1001_s19 = scalar_lea.hbm %s1296_s8, 128  ;;  %p1007_p7 = scmp.lt.u32.totalorder %s1296_s8, %s1518_s1 }
  0x23   : > { %p1002_p3 = scmp.ne.s32.totalorder %s1296_s8, %s1001_s19  ;;  %p1008_p10 = scmp.lt.u32.totalorder %s1006_s6, %s1001_s19 }
  0x24   : > { %p1010_p12 = scmp.lt.u32.totalorder %s1001_s19, %s1296_s8 }
  0x25   : > { %p1004_p5 = pnand %p1309_p4, %p1002_p3  ;;  %p1009_p13 = por %p1008_p10, %p1007_p7 }
  0x27   : > { %p1005_p6 = pneg %p1004_p5  ;;  %p1011_p1 = por %p1010_p12, %p1009_p13 }
  0x29   : > { %p1012_p2 = pnand %p1011_p1, %p1005_p6 }
  0x2b   : > { %1015 = shalt.err (!%p1012_p2)
}
  0x2c   : > { %s1016_s5 = scalar_lea.vmem %s1300_s10, 128  ;;  %s1179_s22 = smov [#allocation8]  }
  0x2d   : > { %p1017_p3 = scmp.ne.s32.totalorder %s1300_s10, %s1016_s5  ;;  %s1021_s23 = sshll.u32 %s1179_s22, 4  ;;  %s1022_s23 = int_to_ptr.vmem [resolvable:$false] %s1021_s23 }
  0x2e   : > { %s1023_s7 = scalar_lea.vmem %s1022_s23, 256  ;;  %p1024_p9 = scmp.lt.s32.totalorder %s1300_s10, %s1022_s23 }
  0x2f   : > { %p1019_p5 = pnand %p1017_p3, %p1309_p4  ;;  %p1025_p8 = scmp.lt.s32.totalorder %s1023_s7, %s1016_s5 }
  0x31   : > { %p1020_p11 = pneg %p1019_p5  ;;  %p1026_p7 = por %p1025_p8, %p1024_p9 }
  0x33   : > { %p1027_p10 = pnand %p1026_p7, %p1020_p11 }
  0x35   : > { %1030 = shalt.err (!%p1027_p10)
}
  0x36   : > { %923 = dma.hbm_to_vmem [thread:$0]  (!%p1287_p0), %s1296_s8, 128, %s1300_s10, %s1303_s11  }
  0x37   : > { %p1520_p12 = scmp.lt.s32.totalorder %s1177_s17, 3  ;;  %p1521_p1 = scmp.ge.s32.totalorder %s1177_s17, 1 }
  0x38   : > { %s1345_s5 = scalar_lea.hbm %s1500_s0, %s1283_s30  ;;  %s175_s22 = scalar_lea.vmem [#allocation5], %s1280_s29 }
  0x39   : > { %p1337_p2 = pnand %p1521_p1, %p1520_p12  ;;  %s183_s23 = sshll.u32 %s175_s22, 4  ;;  %s1348_s23 = int_to_ptr.vmem [resolvable:$true] %s183_s23 }
  0x3a   : > { %s1354_s7 = scalar_lea.hbm %s1502_s2, %s1283_s30  ;;  %s172_s1 = scalar_lea.sflag [#allocation6], %s171_s28 }
  0x3b   : > { %s1522_s19 = scalar_select %p1337_p2, 1, 0 }
  0x3c   : > { %s1031_s20 = scalar_lea.hbm %s1345_s5, 128  ;;  %s1036_s16 = scalar_lea.hbm %s1500_s0, 256 }
  0x3d   : > { %p1032_p8 = scmp.ne.s32.totalorder %s1345_s5, %s1031_s20  ;;  %p1037_p6 = scmp.lt.u32.totalorder %s1345_s5, %s1500_s0 }
  0x3e   : > { %p1038_p13 = scmp.lt.u32.totalorder %s1036_s16, %s1031_s20  ;;  %p1040_p5 = scmp.lt.u32.totalorder %s1031_s20, %s1345_s5 }
  0x3f   : > { %p1034_p9 = pnand %p1032_p8, %p1309_p4 }
  0x40   : > { %p1039_p3 = por %p1038_p13, %p1037_p6 }
  0x41   : > { %p1035_p11 = pneg %p1034_p9 }
  0x42   : > { %p1041_p7 = por %p1040_p5, %p1039_p3 }
  0x44   : > { %p1042_p10 = pnand %p1041_p7, %p1035_p11 }
  0x46   : > { %1045 = shalt.err (!%p1042_p10)
}
  0x47   : > { %s1046_s28 = scalar_lea.vmem %s1348_s23, 128  ;;  %s1180_s30 = smov [#allocation5]  }
  0x48   : > { %p1047_p12 = scmp.ne.s32.totalorder %s1348_s23, %s1046_s28  ;;  %s1051_s8 = sshll.u32 %s1180_s30, 4  ;;  %s1052_s8 = int_to_ptr.vmem [resolvable:$false] %s1051_s8 }
  0x49   : > { %s1053_s26 = scalar_lea.vmem %s1052_s8, 256  ;;  %p1054_p9 = scmp.lt.s32.totalorder %s1348_s23, %s1052_s8 }
  0x4a   : > { %p1049_p1 = pnand %p1047_p12, %p1309_p4  ;;  %p1055_p2 = scmp.lt.s32.totalorder %s1053_s26, %s1046_s28 }
  0x4c   : > { %p1050_p8 = pneg %p1049_p1  ;;  %p1056_p6 = por %p1055_p2, %p1054_p9 }
  0x4e   : > { %p1057_p13 = pnand %p1056_p6, %p1050_p8 }
  0x50   : > { %1060 = shalt.err (!%p1057_p13)
}
  0x51   : > { %920 = dma.hbm_to_vmem [thread:$0]  (!%p1287_p0), %s1345_s5, 128, %s1348_s23, %s172_s1  }
  0x52   : > { %s213_s16 = scalar_lea.vmem [#allocation10], %s1280_s29  ;;  %s1061_s10 = scalar_lea.hbm %s1354_s7, 128 }
  0x53   : > { %s221_s20 = sshll.u32 %s213_s16, 4  ;;  %p1062_p11 = scmp.ne.s32.totalorder %s1354_s7, %s1061_s10  ;;  %s222_s20 = int_to_ptr.vmem [resolvable:$true] %s221_s20 }
  0x54   : > { %s1066_s22 = scalar_lea.hbm %s1502_s2, 256  ;;  %p1067_p5 = scmp.lt.u32.totalorder %s1354_s7, %s1502_s2 }
  0x55   : > { %p1064_p2 = pnand %p1062_p11, %p1309_p4  ;;  %p1068_p7 = scmp.lt.u32.totalorder %s1066_s22, %s1061_s10 }
  0x56   : > { %p1070_p12 = scmp.lt.u32.totalorder %s1061_s10, %s1354_s7 }
  0x57   : > { %p1065_p3 = pneg %p1064_p2  ;;  %p1069_p10 = por %p1068_p7, %p1067_p5 }
  0x59   : > { %p1071_p1 = por %p1070_p12, %p1069_p10 }
  0x5b   : > { %p1072_p8 = pnand %p1071_p1, %p1065_p3 }
  0x5d   : > { %1075 = shalt.err (!%p1072_p8)
}
  0x5e   : > { %s1076_s1 = scalar_lea.vmem %s222_s20, 128  ;;  %s1181_s29 = smov [#allocation10]  }
  0x5f   : > { %p1077_p9 = scmp.ne.s32.totalorder %s222_s20, %s1076_s1  ;;  %s1081_s5 = sshll.u32 %s1181_s29, 4  ;;  %s1082_s5 = int_to_ptr.vmem [resolvable:$false] %s1081_s5 }
  0x60   : > { %s1083_s23 = scalar_lea.vmem %s1082_s5, 256  ;;  %p1084_p11 = scmp.lt.s32.totalorder %s222_s20, %s1082_s5 }
  0x61   : > { %p1079_p6 = pnand %p1077_p9, %p1309_p4  ;;  %p1085_p2 = scmp.lt.s32.totalorder %s1083_s23, %s1076_s1 }
  0x63   : > { %p1080_p13 = pneg %p1079_p6  ;;  %p1086_p0 = por %p1085_p2, %p1084_p11 }
  0x65   : > { %p1087_p5 = pnand %p1086_p0, %p1080_p13 }
  0x67   : > { %1090 = shalt.err (!%p1087_p5)
}
  0x68   : > { %p1523_p7 = scmp.ne.s32.totalorder %s1517_s4, 0  ;;  %p1524_p3 = scmp.ne.s32.totalorder %s1522_s19, 0 }
  0x69   : > { %s1401_s21 = sand.u32 (!%p1524_p3), 1, %s1161_s13   ;;  %p1525_p0 = scmp.ne.s32.totalorder (!%p1524_p3), %s1513_s24, 0 }
  0x6a   : > { %926 = dma.hbm_to_vmem [thread:$0]  (!%p1523_p7), %s1354_s7, 128, %s222_s20, %s1303_s11  }
  0x6b   : > { %230 = sbr.rel (%p1524_p3) target bundleno = 1551 (0x60f), region = 32  ;;  %s1404_s8 = sshll.u32 (!%p1524_p3), %s1401_s21, 3 }
  0x6c   : > { %s233_s26 = scalar_lea.sflag (!%p1524_p3), [#allocation6], %s1401_s21  ;;  %s236_s16 = scalar_lea.vmem (!%p1524_p3), [#allocation5], %s1404_s8 }
  0x72   : > { %1144 = dma.done.wait (%p1525_p0), %s233_s26, 128  }
  0x73   : > { %1146 = vsyncadd (%p1525_p0), %s233_s26, 4294967168  ;;  %s241_s4 = sand.u32 1, %s1240_s18   ;;  %s245_s19 = scalar_lea.vmem [#allocation8], %s1404_s8 }
  0x74   : > { %s242_s11 = scalar_lea.sflag [#allocation9], %s241_s4 }
  0x75   : > { %1148 = dma.done.wait (%p1525_p0), %s242_s11, 256  }
  0x76   : > { %1150 = vsyncadd (%p1525_p0), %s242_s11, 4294967040  ;;  %vm296_vm0 = vcmask 261120   ;;  %v1182_v0 = vmov 0.0   ;;  %vm1183_vm1 = vmmov 0   ;;  %v301_v1 = vld [vmem:[%s245_s19] sm:$0xff]  ;;  %v299_v2 = vld [vmem:[%s236_s16] sm:$0xff] }
  0x77   : > { %889 = vmatprep.subr.mxu0 %v1182_v0  ;;  %297 = vst.msk [vmem:[#allocation4] sm:$0xff] %vm296_vm0, %v1182_v0  ;;  %298 = vst.msk [vmem:[#allocation4 + $0x8] sm:$0xff] %vm296_vm0, %v1182_v0  ;;  %891 = vmatprep.mubr.msk.f32.mxu0 %vm1183_vm1, %v1182_v0  ;;  %v300_v3 = vmul.f32 0.17677669, %v299_v2  ;;  %vm291_vm2 = vcmask 7168   ;;  %v1184_v4 = vmov -inf  }
  0x78   : > { %894 = vmatprep.subr.mxu1 %v1182_v0  ;;  %896 = vmatprep.mubr.msk.f32.mxu1 %vm1183_vm1, %v1182_v0  ;;  %292 = vst.msk [vmem:[#allocation2] sm:$0xff] %vm291_vm2, %v1184_v4  ;;  %293 = vst.msk [vmem:[#allocation2 + $0x8] sm:$0xff] %vm291_vm2, %v1184_v4  ;;  %vm382_vm3 = vcmask 64512   ;;  %v1185_v8 = vmov 0   ;;  %s1186_s18 = smov 96   ;;  %s254_s24 = scalar_lea.vmem [#allocation10], %s1404_s8 }
  0x79   : > { %890 = vmatpush3.xpose.msk.msra.mxu0 %vm296_vm0, %v301_v1  ;;  %294 = vst.msk [vmem:[#allocation3] sm:$0xff] %vm291_vm2, %v1182_v0  ;;  %295 = vst.msk [vmem:[#allocation3 + $0x8] sm:$0xff] %vm291_vm2, %v1182_v0  ;;  %987 = vset.pattern.permute.xlu0 %v1185_v8  ;;  %v302_v13 = vld [vmem:[%s254_s24] sm:$0xff]  ;;  %s286_s7 = scalar_lea.vmem [#allocation11], %s1404_s8  ;;  %s1187_s20 = smov 32   ;;  %vm711_vm4 = vcmask 523520  }
  0x7a   : > { %904 = vmatprep.subr.mxu0 %v1182_v0  ;;  %988 = vset.pattern.permute.xlu1 %v1185_v8  ;;  %s878_s10 = sshll.u32 %s1169_s15, 7  ;;  %s728_s6 = sshll.u32 %s286_s7, 4  ;;  %s1453_s6 = int_to_ptr.vmem [resolvable:$true] %s728_s6 }
  0x7b   : > { %496 = vrot.lane.b32.xlu1 %v301_v1, %s1186_s18  ;;  %895 = vmatpush3.msra.mxu1 %v302_v13  ;;  %s1451_s28 = scalar_lea.hbm %s1503_s3, %s878_s10  ;;  %s714_s30 = scalar_lea.sflag [#allocation7], %s1401_s21 }
  0x7c   : > { %892 = vmatmul.mubr.msk.f32.vlgmr.msra.gmra.mrb[0].mxu0 %vm296_vm0, %v300_v3  ;;  %899 = vmatprep.subr.mxu1 %v1182_v0  ;;  %s1091_s1 = scalar_lea.vmem %s1453_s6, 128  ;;  %p1526_p10 = scmp.ne.s32.totalorder %s1514_s25, 0 }
  0x7d   : > { %906 = vmatprep.mubr.msk.f32.mxu0 %vm1183_vm1, %v1182_v0  ;;  %p1092_p4 = scmp.ne.s32.totalorder %s1453_s6, %s1091_s1  ;;  %s1188_s15 = smov [#allocation11]  }
  0x7e   : > { %v405_v51 = vld [vmem:[#allocation4] sm:$0xff]  ;;  %v598_v60 = vld [vmem:[#allocation4 + $0x8] sm:$0xff]  ;;  %s1095_s29 = sshll.u32 %s1188_s15, 4  ;;  %s1096_s29 = int_to_ptr.vmem [resolvable:$false] %s1095_s29 }
  0x7f   : > { %493 = vrot.lane.b32.xlu1 %v300_v3, %s1186_s18  ;;  %v380_v9 = vld [vmem:[#allocation2] sm:$0xff]  ;;  %v573_v25 = vld [vmem:[#allocation2 + $0x8] sm:$0xff]  ;;  %p1093_p12 = pnand %p1092_p4, %p1526_p10  ;;  %s1097_s5 = scalar_lea.vmem %s1096_s29, 256 }
  0x80   : > { %v381_v40 = vld [vmem:[#allocation3] sm:$0xff]  ;;  %v575_v46 = vld [vmem:[#allocation3 + $0x8] sm:$0xff]  ;;  %p1098_p8 = scmp.lt.s32.totalorder %s1453_s6, %s1096_s29  ;;  %p1099_p9 = scmp.lt.s32.totalorder %s1097_s5, %s1091_s1 }
  0x81   : > { %p1094_p1 = pneg %p1093_p12 }
  0x82   : > { %p1100_p6 = por %p1099_p9, %p1098_p8 }
  0x84   : > { %p1101_p13 = pnand %p1100_p6, %p1094_p1 }
  0xed   : > { %v497_v17 = vpop.permute.xlu1 %496 }
  0xf1   : > { %v494_v19 = vpop.permute.xlu1 %493 }
 0x14f   : > { %v376_v5 = vpop.f32.mrb[0].mxu0 }
 0x150   : > { %v893_v6 = vpop.f32.mrb[1].mxu0  ;;  %v383_v7 = vsel %vm382_vm3, %v376_v5, -inf }
 0x151   : > { %384 = vmax.xlane.f32.xlu0 %v383_v7 }
 0x1de   : > { %v385_v10 = vpop.xlane.xlu0 %384 }
 0x1df   : > { %v386_v11 = vmax.f32 %v380_v9, %v385_v10 }
 0x1e1   : > { %v387_v12 = vsub.f32 %v380_v9, %v386_v11  ;;  %487 = vst.msk [vmem:[#allocation2] sm:$0xff] %vm291_vm2, %v386_v11  ;;  %392 = vperm.xlu0 %987, %v386_v11  }
 0x1e3   : > { %v388_v37 = vmul.f32 1.442695, %v387_v12 }
 0x1e5   : > { %606 = vrot.lane.b32.xlu0 %v302_v13, %s1186_s18 }
 0x260   : > { %v393_v14 = vpop.permute.xlu0 %392 }
 0x261   : > { %v395_v15 = vsub.f32 %v376_v5, %v393_v14 }
 0x263   : > { %v396_v16 = vmul.f32 1.442695, %v395_v15 }
 0x264   : > { %v607_v29 = vpop.permute.xlu0 %606 }
 0x265   : > { %989 = vpow2.f32 %v396_v16  ;;  %905 = vmatpush3.msra.mxu0 %v607_v29 }
 0x26f   : > { %v990_v18 = vpop.eup %989 }
 0x270   : > { %897 = vmatmul.mubr.msk.f32.vlgmr.msra.gmra.mrb[0].mxu1 %vm382_vm3, %v990_v18  ;;  %v399_v30 = vsel %vm382_vm3, %v990_v18, 0.0 }
 0x271   : > { %900 = vmatpush3.xpose.msk.msra.mxu1 %vm296_vm0, %v497_v17  ;;  %901 = vmatprep.mubr.msk.f32.mxu1 %vm1183_vm1, %v1182_v0 }
 0x274   : > { %902 = vmatmul.mubr.msk.f32.vlgmr.msra.gmra.mrb[2].mxu1 %vm296_vm0, %v494_v19 }
 0x343   : > { %v481_v20 = vpop.f32.mrb[0].mxu1 }
 0x344   : > { %v898_v21 = vpop.f32.mrb[1].mxu1 }
 0x347   : > { %v568_v22 = vpop.f32.mrb[2].mxu1 }
 0x348   : > { %v903_v23 = vpop.f32.mrb[3].mxu1  ;;  %v576_v24 = vsel %vm382_vm3, %v568_v22, -inf }
 0x349   : > { %577 = vmax.xlane.f32.xlu1 %v576_v24 }
 0x3d6   : > { %v578_v26 = vpop.xlane.xlu1 %577 }
 0x3d7   : > { %v579_v27 = vmax.f32 %v573_v25, %v578_v26 }
 0x3d9   : > { %v580_v28 = vsub.f32 %v573_v25, %v579_v27  ;;  %684 = vst.msk [vmem:[#allocation2 + $0x8] sm:$0xff] %vm291_vm2, %v579_v27  ;;  %585 = vperm.xlu1 %988, %v579_v27  }
 0x3db   : > { %v581_v36 = vmul.f32 1.442695, %v580_v28 }
 0x3fd   : > { %400 = vadd.xlane.f32.xlu1 %v399_v30 }
 0x458   : > { %v586_v31 = vpop.permute.xlu1 %585 }
 0x459   : > { %v588_v32 = vsub.f32 %v568_v22, %v586_v31 }
 0x45b   : > { %v589_v33 = vmul.f32 1.442695, %v588_v32 }
 0x45d   : > { %991 = vpow2.f32 %v589_v33 }
 0x45e   : > { %993 = vpow2.f32 %v581_v36 }
 0x45f   : > { %995 = vpow2.f32 %v388_v37 }
 0x467   : > { %v992_v34 = vpop.eup %991 }
 0x468   : > { %907 = vmatmul.mubr.msk.f32.vlgmr.msra.gmra.mrb[2].mxu0 %vm382_vm3, %v992_v34  ;;  %v592_v35 = vsel %vm382_vm3, %v992_v34, 0.0  ;;  %v994_v38 = vpop.eup %993 }
 0x469   : > { %593 = vadd.xlane.f32.xlu0 %v592_v35  ;;  %v996_v39 = vpop.eup %995  ;;  %v591_v47 = vmul.f32 %v994_v38, %v575_v46 }
 0x46a   : > { %v398_v41 = vmul.f32 %v996_v39, %v381_v40 }
 0x47f   : > { %601 = vperm.xlu0 %987, %v994_v38  }
 0x483   : > { %408 = vperm.xlu0 %987, %v996_v39  }
 0x48a   : > { %v401_v42 = vpop.xlane.xlu1 %400 }
 0x48b   : > { %v402_v43 = vadd.f32 %v401_v42, %v398_v41 }
 0x48d   : > { %404 = vst.msk [vmem:[#allocation3] sm:$0xff] %vm291_vm2, %v402_v43 }
 0x494   : > { %v688_v44 = vld [vmem:[#allocation3] sm:$0xff] }
 0x495   : > { %997 = vrcp.f32 %v688_v44 }
 0x49f   : > { %v998_v45 = vpop.eup %997 }
 0x4a0   : > { %693 = vperm.xlu0 %987, %v998_v45  }
 0x4f6   : > { %v594_v48 = vpop.xlane.xlu0 %593 }
 0x4f7   : > { %v595_v49 = vadd.f32 %v594_v48, %v591_v47 }
 0x4f9   : > { %596 = vst.msk [vmem:[#allocation3 + $0x8] sm:$0xff] %vm291_vm2, %v595_v49 }
 0x4fe   : > { %v602_v50 = vpop.permute.xlu0 %601 }
 0x4ff   : > { %v604_v61 = vmul.f32 %v602_v50, %v598_v60 }
 0x500   : > { %v698_v52 = vld [vmem:[#allocation3 + $0x8] sm:$0xff] }
 0x501   : > { %999 = vrcp.f32 %v698_v52 }
 0x502   : > { %v409_v53 = vpop.permute.xlu0 %408 }
 0x503   : > { %v411_v54 = vmul.f32 %v409_v53, %v405_v51 }
 0x505   : > { %v485_v55 = vadd.f32 %v481_v20, %v411_v54 }
 0x507   : > { %486 = vst.msk [vmem:[#allocation4] sm:$0xff] %vm296_vm0, %v485_v55 }
 0x50b   : > { %v1000_v56 = vpop.eup %999 }
 0x50c   : > { %703 = vperm.xlu1 %988, %v1000_v56  }
 0x50e   : > { %v690_v57 = vld [vmem:[#allocation4] sm:$0xff] }
 0x51f   : > { %v694_v58 = vpop.permute.xlu0 %693 }
 0x520   : > { %v696_v59 = vmul.f32 %v694_v58, %v690_v57 }
 0x522   : > { %697 = vst.msk [vmem:[%s286_s7] sm:$0xff] %vm296_vm0, %v696_v59 }
 0x53b   : > { %v678_v62 = vpop.f32.mrb[2].mxu0 }
 0x53c   : > { %v682_v63 = vadd.f32 %v678_v62, %v604_v61  ;;  %v908_v0 = vpop.f32.mrb[3].mxu0 }
 0x53e   : > { %683 = vst.msk [vmem:[#allocation4 + $0x8] sm:$0xff] %vm296_vm0, %v682_v63 }
 0x545   : > { %v700_v2 = vld [vmem:[#allocation4 + $0x8] sm:$0xff] }
 0x58b   : > { %v704_v1 = vpop.permute.xlu1 %703 }
 0x58c   : > { %v706_v3 = vmul.f32 %v704_v1, %v700_v2 }
 0x58e   : > { %708 = vrot.lane.b32.xlu0 %v706_v3, %s1187_s20 }
 0x600   : > { %v709_v4 = vpop.permute.xlu0 %708 }
 0x601   : > { %712 = vst.msk [vmem:[%s286_s7] sm:$0xff] %vm711_vm4, %v709_v4 }
 0x602   : > { %1104 = shalt.err (!%p1101_p13)
}
 0x603   : > { %s1105_s23 = scalar_lea.hbm %s1451_s28, 128  ;;  %s1109_s26 = scalar_lea.hbm %s1503_s3, 256 }
 0x604   : > { %p1106_p11 = scmp.ne.s32.totalorder %s1451_s28, %s1105_s23  ;;  %p1110_p7 = scmp.lt.u32.totalorder %s1451_s28, %s1503_s3 }
 0x605   : > { %p1111_p3 = scmp.lt.u32.totalorder %s1109_s26, %s1105_s23  ;;  %p1113_p4 = scmp.lt.u32.totalorder %s1105_s23, %s1451_s28 }
 0x606   : > { %p1107_p2 = pnand %p1106_p11, %p1526_p10 }
 0x607   : > { %p1112_p0 = por %p1111_p3, %p1110_p7 }
 0x608   : > { %p1108_p5 = pneg %p1107_p2 }
 0x609   : > { %p1114_p12 = por %p1113_p4, %p1112_p0 }
 0x60b   : > { %p1115_p1 = pnand %p1114_p12, %p1108_p5 }
 0x60d   : > { %1118 = shalt.err (!%p1115_p1)
}
 0x60e   : > { %915 = dma.vmem_to_hbm [thread:$0]  (%p1526_p10), %s1453_s6, 128, %s1451_s28, %s714_s30  }
 0x60f PF: > { %s740_s11 = sand.u32 1, %s1157_s12   ;;  %p1527_p8 = scmp.ne.s32.totalorder %s1516_s27, 0 }
 0x610   : > { %p1528_p9 = scmp.ge.s32.totalorder %s1177_s17, 2  ;;  %s741_s19 = scalar_lea.sflag [#allocation7], %s740_s11 }
 0x612   : > { %p928_p6 = pnand %p1528_p9, %p1527_p8 }
 0x614   : > { %1152 = dma.done.wait (!%p928_p6), %s741_s19, 128  }
 0x615   : > { %1154 = vsyncadd (!%p928_p6), %s741_s19, 4294967168  ;;  %s22_s17 = sadd.s32 1, %s1177_s17   ;;  %s1529_s25 = sld [smem:[#allocation17_spill]] }
 0x616   : > { %p19_p13 = scmp.ge.s32.totalorder %s22_s17, 4   ;;  %s1530_s15 = sld [smem:[#allocation15_spill]] }
 0x617   : > { %s1531_s16 = sld [smem:[#allocation16_spill]]  ;;  %s1532_s12 = smov %s1161_s13 }
 0x618   : > { %s1533_s13 = smov %s1165_s14  ;;  %21 = sbr.rel (!%p19_p13) target bundleno = 10 (0xa), region = 112 }
 0x61b   : > { %s1534_s14 = smov %s1529_s25 }
 0x61f   :  { %746 = vsyncpa [#allocation6], 1 }
 0x620   :  { %748 = vsyncpa [#allocation6 + $0x1], 1 }
 0x621   :  { %749 = vsyncpa [#allocation9], 1 }
 0x622   :  { %751 = vsyncpa [#allocation9 + $0x1], 1 }
 0x623   :  { %752 = vsyncpa [#allocation7], 1 }
 0x624   :  { %754 = vsyncpa [#allocation7 + $0x1], 1 }

</bundles_post_ra>
